<compile_context>
chip_gen: v5e
topology: v5e:2x2
jax: 0.10.0
libtpu: 0.0.40
codegen_flags: <defaults>
</compile_context>

<pallas_src>
import functools

import jax
import jax.numpy as jnp
from jax.experimental import pallas as pl
from jax.experimental.pallas import tpu as pltpu


HIDDEN = 32
IN_FEATURES = 26
_SUBLANE = 16          # row-tile granularity (bf16-safe sublane multiple)


def _round_up(a, b):
    return -(-a // b) * b


def _default_pack():
    """Batch rows packed per lane group: 8 on 256-wide MXUs (v6e/v7x), else 4."""
    try:
        kind = jax.devices()[0].device_kind.lower()
    except Exception:
        return 4
    for old in ("v2", "v3", "v4", "v5"):
        if old in kind:
            return 4
    return 8


# ------------------------------- kernel --------------------------------------

def _deep_relu_kernel(n_inner, x_ref, w1_ref, b1_ref, wi_ref, bi_ref,
                      wn_ref, bn_ref, o_ref):
    """One batch tile of the packed MLP forward (P = PACK, H = P*32, I = P*26).

    x_ref : (TB, I)  bf16       w1_ref: (I, H)  bf16     b1_ref: (1, H) f32
    wi_ref: (L, H, H) bf16      bi_ref: (L, 1, H) f32
    wn_ref: (H, P)  bf16        bn_ref: (1, P)  f32
    o_ref : (TB, P) f32
    """
    cdt = w1_ref.dtype  # bf16 MXU operand dtype; accumulation stays f32

    # layer_1 + ReLU (block-diagonal packed)
    h = jnp.dot(x_ref[...], w1_ref[...], preferred_element_type=jnp.float32)
    h = jnp.maximum(h + b1_ref[...], 0.0)

    def layer(hh, w, b):
        hh = jnp.dot(hh.astype(cdt), w, preferred_element_type=jnp.float32)
        return jnp.maximum(hh + b, 0.0)

    if n_inner > 0:
        if n_inner <= 8:
            # short, fixed trip count: static unroll
            for i in range(n_inner):
                h = layer(h, wi_ref[i], bi_ref[i])
        else:
            # deep network: visible loop keeps live ranges bounded; unroll=2 exposes
            # cross-layer MXU/VPU overlap to the scheduler.
            h = jax.lax.fori_loop(
                0, n_inner, lambda i, hh: layer(hh, wi_ref[i], bi_ref[i]), h,
                unroll=2)

    # layer_n + sigmoid * 9 + 1
    logits = jnp.dot(h.astype(cdt), wn_ref[...], preferred_element_type=jnp.float32)
    logits = logits + bn_ref[...]
    o_ref[...] = (jax.nn.sigmoid(logits) * 9.0 + 1.0).astype(o_ref.dtype)


# ------------------------------- wrapper -------------------------------------

def deep_relu_forward(x, packed_params, num_layers, max_tile_rows=2048,
                      min_grid_steps=4):
    """x: (batch, 26).  packed_params from pack_params()."""
    w1p, b1p, wip, bip, wnp, bnp = packed_params
    packed_in, packed_h = w1p.shape
    pack = packed_h // HIDDEN
    assert packed_in == pack * IN_FEATURES
    n_inner = max(num_layers - 2, 0)
    num_l = wip.shape[0]
    batch = x.shape[0]

    # --- pack `pack` rows per packed row (free row-major reshape), stream as bf16 ---
    b_pk = _round_up(batch, pack)
    x = x.astype(jnp.float32)
    if b_pk != batch:
        x = jnp.pad(x, ((0, b_pk - batch), (0, 0)))
    xp = x.reshape(b_pk // pack, packed_in).astype(jnp.bfloat16)

    # --- tile rows: big tiles, but keep >= min_grid_steps steps when batch allows ---
    bp = xp.shape[0]
    tb = _round_up(max(1, -(-bp // min_grid_steps)), _SUBLANE)
    tb = max(_SUBLANE, min(tb, _round_up(max_tile_rows, _SUBLANE)))
    bp_pad = _round_up(bp, tb)
    if bp_pad != bp:
        xp = jnp.pad(xp, ((0, bp_pad - bp), (0, 0)))

    grid = (bp_pad // tb,)
    kernel = functools.partial(_deep_relu_kernel, n_inner)

    flops = 2 * bp_pad * (packed_in * packed_h
                          + n_inner * packed_h * packed_h
                          + packed_h * pack)
    bytes_accessed = (xp.size * xp.dtype.itemsize
                      + bp_pad * pack * 4
                      + (w1p.size + wip.size + wnp.size) * 2
                      + (b1p.size + bip.size + bnp.size) * 4)

    out = pl.pallas_call(
        kernel,
        out_shape=jax.ShapeDtypeStruct((bp_pad, pack), jnp.float32),
        grid=grid,
        in_specs=[
            pl.BlockSpec((tb, packed_in), lambda i: (i, 0)),                 # x tile (pipelined)
            pl.BlockSpec((packed_in, packed_h), lambda i: (0, 0)),           # w1 (resident)
            pl.BlockSpec((1, packed_h), lambda i: (0, 0)),                   # b1
            pl.BlockSpec((num_l, packed_h, packed_h), lambda i: (0, 0, 0)),  # wi
            pl.BlockSpec((num_l, 1, packed_h), lambda i: (0, 0, 0)),         # bi
            pl.BlockSpec((packed_h, pack), lambda i: (0, 0)),                # wn
            pl.BlockSpec((1, pack), lambda i: (0, 0)),                       # bn
        ],
        out_specs=pl.BlockSpec((tb, pack), lambda i: (i, 0)),
        compiler_params=pltpu.CompilerParams(
            dimension_semantics=("parallel",),       # shards grid steps across TCs on v7x
            vmem_limit_bytes=64 * 1024 * 1024,
        ),
        cost_estimate=pl.CostEstimate(
            flops=int(flops),
            transcendentals=int(bp_pad * pack),
            bytes_accessed=int(bytes_accessed),
        ),
    )(xp, w1p, b1p, wip, bip, wnp, bnp)

    # unpack (Bp, P) -> (Bp*P, 1) and drop padding
    return out.reshape(bp_pad * pack, 1)[:batch]


# ----------------------------- parameters ------------------------------------

def init_params(key, num_layers):
    """Base (unpacked) params; uniform fan-in init like torch.nn.Linear."""
    n_inner = max(num_layers - 2, 0)
    keys = jax.random.split(key, 6)

    def unif(k, shape, fan_in):
        bound = 1.0 / jnp.sqrt(jnp.float32(fan_in))
        return jax.random.uniform(k, shape, jnp.float32, -bound, bound)

    w1 = unif(keys[0], (IN_FEATURES, HIDDEN), IN_FEATURES)          # (26, 32)
    b1 = unif(keys[1], (1, HIDDEN), IN_FEATURES)                    # (1, 32)
    li = max(n_inner, 1)  # keep a non-empty (tiny) leading dim even if unused
    wi = unif(keys[2], (li, HIDDEN, HIDDEN), HIDDEN)                # (L, 32, 32)
    bi = unif(keys[3], (li, 1, HIDDEN), HIDDEN)                     # (L, 1, 32)
    wn = unif(keys[4], (HIDDEN, 1), HIDDEN)                         # (32, 1)
    bn = unif(keys[5], (1, 1), HIDDEN)                              # (1, 1)
    return w1, b1, wi, bi, wn, bn


def _block_diag(w, pack):
    m, n = w.shape
    out = jnp.zeros((pack * m, pack * n), w.dtype)
    for j in range(pack):
        out = out.at[j * m:(j + 1) * m, j * n:(j + 1) * n].set(w)
    return out


def pack_params(params, pack=None):
    """Block-diagonal lane-packed weights (bf16 MXU operands), f32 biases.  Done once."""
    if pack is None:
        pack = _default_pack()
    w1, b1, wi, bi, wn, bn = params
    w1p = _block_diag(w1, pack).astype(jnp.bfloat16)                         # (P*26, P*32)
    b1p = jnp.tile(b1, (1, pack)).astype(jnp.float32)                        # (1, P*32)
    wip = jnp.stack([_block_diag(wi[i], pack)
                     for i in range(wi.shape[0])]).astype(jnp.bfloat16)      # (L, P*32, P*32)
    bip = jnp.tile(bi, (1, 1, pack)).astype(jnp.float32)                     # (L, 1, P*32)
    wnp = _block_diag(wn, pack).astype(jnp.bfloat16)                         # (P*32, P)
    bnp = jnp.tile(bn, (1, pack)).astype(jnp.float32)                        # (1, P)
    return w1p, b1p, wip, bip, wnp, bnp


# ----------------------------- reference -------------------------------------

def reference_forward(x, params, num_layers):
    """Pure-JAX reference matching the PyTorch forward (f32, HIGHEST precision)."""
    w1, b1, wi, bi, wn, bn = params
    n_inner = max(num_layers - 2, 0)
    hp = jax.lax.Precision.HIGHEST
    h = jnp.maximum(jnp.dot(x, w1, precision=hp) + b1, 0.0)
    for i in range(n_inner):
        h = jnp.maximum(jnp.dot(h, wi[i], precision=hp) + bi[i], 0.0)
    return jax.nn.sigmoid(jnp.dot(h, wn, precision=hp) + bn) * 9.0 + 1.0


if __name__ == "__main__":
    num_layers = 5          # -> 3 inner Linear+ReLU layers
    batch = 256             # small, but enough packed rows for a multi-step grid

    key = jax.random.PRNGKey(0)
    k_x, k_p = jax.random.split(key)
    x = jax.random.normal(k_x, (batch, IN_FEATURES), jnp.float32)
    params = init_params(k_p, num_layers)
    packed = pack_params(params)

    out = deep_relu_forward(x, packed, num_layers)
    out = jax.block_until_ready(out)

    ref = reference_forward(x, params, num_layers)
    assert out.shape == (batch, 1)
    # bf16 MXU operands with f32 accumulation: comfortably within 3e-2 for this head.
    max_err = float(jnp.max(jnp.abs(out - ref)))
    assert jnp.allclose(out, ref, atol=3e-2, rtol=3e-2), max_err

    print("KERNEL_OK")
</pallas_src>

<mosaic_0001>
module attributes {stable_mosaic.version = 11 : i64} {
  func.func @_deep_relu_kernel(%arg0: i32, %arg1: memref<16x208xbf16, #tpu.memory_space<vmem>>, %arg2: memref<208x256xbf16, #tpu.memory_space<vmem>>, %arg3: memref<1x256xf32, #tpu.memory_space<vmem>>, %arg4: memref<3x256x256xbf16, #tpu.memory_space<vmem>>, %arg5: memref<3x1x256xf32, #tpu.memory_space<vmem>>, %arg6: memref<256x8xbf16, #tpu.memory_space<vmem>>, %arg7: memref<1x8xf32, #tpu.memory_space<vmem>>, %arg8: memref<16x8xf32, #tpu.memory_space<vmem>>) attributes {dimension_semantics = [#tpu.dimension_semantics<parallel>], iteration_bounds = array<i64: 2>, scalar_prefetch = 0 : i64, scratch_operands = 0 : i64, tpu.core_type = #tpu.core_type<tc>, window_params = [{transform_indices = @transform_0, window_bounds = array<i64: 16, 208>}, {pipeline_mode = #tpu.pipeline_mode<synchronous>, transform_indices = @transform_1, window_bounds = array<i64: 208, 256>}, {pipeline_mode = #tpu.pipeline_mode<synchronous>, transform_indices = @transform_2, window_bounds = array<i64: 1, 256>}, {pipeline_mode = #tpu.pipeline_mode<synchronous>, transform_indices = @transform_3, window_bounds = array<i64: 3, 256, 256>}, {pipeline_mode = #tpu.pipeline_mode<synchronous>, transform_indices = @transform_4, window_bounds = array<i64: 3, 1, 256>}, {pipeline_mode = #tpu.pipeline_mode<synchronous>, transform_indices = @transform_5, window_bounds = array<i64: 256, 8>}, {pipeline_mode = #tpu.pipeline_mode<synchronous>, transform_indices = @transform_6, window_bounds = array<i64: 1, 8>}, {transform_indices = @transform_7, window_bounds = array<i64: 16, 8>}]} {
    %c0 = arith.constant 0 : index
    %c0_0 = arith.constant 0 : index
    %0 = vector.load %arg1[%c0, %c0_0] : memref<16x208xbf16, #tpu.memory_space<vmem>>, vector<16x208xbf16>
    %c0_1 = arith.constant 0 : index
    %c0_2 = arith.constant 0 : index
    %1 = vector.load %arg2[%c0_1, %c0_2] : memref<208x256xbf16, #tpu.memory_space<vmem>>, vector<208x256xbf16>
    %cst = arith.constant dense<0.000000e+00> : vector<16x256xf32>
    %2 = tpu.matmul %0, %1, %cst {dimension_numbers = #tpu.dot_dimension_numbers<[1], [0], [0], [1], [0, 0, 1, 1], [], []>} : vector<16x208xbf16>, vector<208x256xbf16>, vector<16x256xf32> -> vector<16x256xf32>
    %c0_3 = arith.constant 0 : index
    %c0_4 = arith.constant 0 : index
    %3 = vector.load %arg3[%c0_3, %c0_4] : memref<1x256xf32, #tpu.memory_space<vmem>>, vector<1x256xf32>
    %4 = vector.broadcast %3 : vector<1x256xf32> to vector<16x256xf32>
    %5 = arith.addf %2, %4 : vector<16x256xf32>
    %cst_5 = arith.constant 0.000000e+00 : f32
    %6 = vector.broadcast %cst_5 : f32 to vector<16x256xf32>
    %7 = arith.maximumf %5, %6 : vector<16x256xf32>
    %c0_6 = arith.constant 0 : index
    %c0_7 = arith.constant 0 : index
    %c0_8 = arith.constant 0 : index
    %8 = vector.load %arg4[%c0_6, %c0_7, %c0_8] : memref<3x256x256xbf16, #tpu.memory_space<vmem>>, vector<1x256x256xbf16>
    %9 = vector.shape_cast %8 : vector<1x256x256xbf16> to vector<256x256xbf16>
    %c0_9 = arith.constant 0 : index
    %c0_10 = arith.constant 0 : index
    %c0_11 = arith.constant 0 : index
    %10 = vector.load %arg5[%c0_9, %c0_10, %c0_11] : memref<3x1x256xf32, #tpu.memory_space<vmem>>, vector<1x1x256xf32>
    %11 = vector.shape_cast %10 : vector<1x1x256xf32> to vector<1x256xf32>
    %12 = arith.truncf %7 : vector<16x256xf32> to vector<16x256xbf16>
    %cst_12 = arith.constant dense<0.000000e+00> : vector<16x256xf32>
    %13 = tpu.matmul %12, %9, %cst_12 {dimension_numbers = #tpu.dot_dimension_numbers<[1], [0], [0], [1], [0, 0, 1, 1], [], []>} : vector<16x256xbf16>, vector<256x256xbf16>, vector<16x256xf32> -> vector<16x256xf32>
    %14 = vector.broadcast %11 : vector<1x256xf32> to vector<16x256xf32>
    %15 = arith.addf %13, %14 : vector<16x256xf32>
    %cst_13 = arith.constant 0.000000e+00 : f32
    %16 = vector.broadcast %cst_13 : f32 to vector<16x256xf32>
    %17 = arith.maximumf %15, %16 : vector<16x256xf32>
    %c1 = arith.constant 1 : index
    %c0_14 = arith.constant 0 : index
    %c0_15 = arith.constant 0 : index
    %18 = vector.load %arg4[%c1, %c0_14, %c0_15] : memref<3x256x256xbf16, #tpu.memory_space<vmem>>, vector<1x256x256xbf16>
    %19 = vector.shape_cast %18 : vector<1x256x256xbf16> to vector<256x256xbf16>
    %c1_16 = arith.constant 1 : index
    %c0_17 = arith.constant 0 : index
    %c0_18 = arith.constant 0 : index
    %20 = vector.load %arg5[%c1_16, %c0_17, %c0_18] : memref<3x1x256xf32, #tpu.memory_space<vmem>>, vector<1x1x256xf32>
    %21 = vector.shape_cast %20 : vector<1x1x256xf32> to vector<1x256xf32>
    %22 = arith.truncf %17 : vector<16x256xf32> to vector<16x256xbf16>
    %cst_19 = arith.constant dense<0.000000e+00> : vector<16x256xf32>
    %23 = tpu.matmul %22, %19, %cst_19 {dimension_numbers = #tpu.dot_dimension_numbers<[1], [0], [0], [1], [0, 0, 1, 1], [], []>} : vector<16x256xbf16>, vector<256x256xbf16>, vector<16x256xf32> -> vector<16x256xf32>
    %24 = vector.broadcast %21 : vector<1x256xf32> to vector<16x256xf32>
    %25 = arith.addf %23, %24 : vector<16x256xf32>
    %cst_20 = arith.constant 0.000000e+00 : f32
    %26 = vector.broadcast %cst_20 : f32 to vector<16x256xf32>
    %27 = arith.maximumf %25, %26 : vector<16x256xf32>
    %c2 = arith.constant 2 : index
    %c0_21 = arith.constant 0 : index
    %c0_22 = arith.constant 0 : index
    %28 = vector.load %arg4[%c2, %c0_21, %c0_22] : memref<3x256x256xbf16, #tpu.memory_space<vmem>>, vector<1x256x256xbf16>
    %29 = vector.shape_cast %28 : vector<1x256x256xbf16> to vector<256x256xbf16>
    %c2_23 = arith.constant 2 : index
    %c0_24 = arith.constant 0 : index
    %c0_25 = arith.constant 0 : index
    %30 = vector.load %arg5[%c2_23, %c0_24, %c0_25] : memref<3x1x256xf32, #tpu.memory_space<vmem>>, vector<1x1x256xf32>
    %31 = vector.shape_cast %30 : vector<1x1x256xf32> to vector<1x256xf32>
    %32 = arith.truncf %27 : vector<16x256xf32> to vector<16x256xbf16>
    %cst_26 = arith.constant dense<0.000000e+00> : vector<16x256xf32>
    %33 = tpu.matmul %32, %29, %cst_26 {dimension_numbers = #tpu.dot_dimension_numbers<[1], [0], [0], [1], [0, 0, 1, 1], [], []>} : vector<16x256xbf16>, vector<256x256xbf16>, vector<16x256xf32> -> vector<16x256xf32>
    %34 = vector.broadcast %31 : vector<1x256xf32> to vector<16x256xf32>
    %35 = arith.addf %33, %34 : vector<16x256xf32>
    %cst_27 = arith.constant 0.000000e+00 : f32
    %36 = vector.broadcast %cst_27 : f32 to vector<16x256xf32>
    %37 = arith.maximumf %35, %36 : vector<16x256xf32>
    %38 = arith.truncf %37 : vector<16x256xf32> to vector<16x256xbf16>
    %c0_28 = arith.constant 0 : index
    %c0_29 = arith.constant 0 : index
    %39 = vector.load %arg6[%c0_28, %c0_29] : memref<256x8xbf16, #tpu.memory_space<vmem>>, vector<256x8xbf16>
    %cst_30 = arith.constant dense<0.000000e+00> : vector<16x8xf32>
    %40 = tpu.matmul %38, %39, %cst_30 {dimension_numbers = #tpu.dot_dimension_numbers<[1], [0], [0], [1], [0, 0, 1, 1], [], []>} : vector<16x256xbf16>, vector<256x8xbf16>, vector<16x8xf32> -> vector<16x8xf32>
    %c0_31 = arith.constant 0 : index
    %c0_32 = arith.constant 0 : index
    %41 = vector.load %arg7[%c0_31, %c0_32] : memref<1x8xf32, #tpu.memory_space<vmem>>, vector<1x8xf32>
    %42 = vector.broadcast %41 : vector<1x8xf32> to vector<16x8xf32>
    %43 = arith.addf %40, %42 : vector<16x8xf32>
    %44 = arith.negf %43 : vector<16x8xf32>
    %45 = math.exp %44 : vector<16x8xf32>
    %cst_33 = arith.constant 1.000000e+00 : f32
    %46 = vector.broadcast %cst_33 : f32 to vector<16x8xf32>
    %47 = arith.addf %46, %45 : vector<16x8xf32>
    %48 = arith.divf %46, %47 : vector<16x8xf32>
    %cst_34 = arith.constant 9.000000e+00 : f32
    %49 = vector.broadcast %cst_34 : f32 to vector<16x8xf32>
    %50 = arith.mulf %48, %49 : vector<16x8xf32>
    %cst_35 = arith.constant 1.000000e+00 : f32
    %51 = vector.broadcast %cst_35 : f32 to vector<16x8xf32>
    %52 = arith.addf %50, %51 : vector<16x8xf32>
    %c0_36 = arith.constant 0 : index
    %c0_37 = arith.constant 0 : index
    %53 = vector.load %arg8[%c0_36, %c0_37] : memref<16x8xf32, #tpu.memory_space<vmem>>, vector<16x8xf32>
    tpu.vector_store %arg8[%c0_36, %c0_37], %52 {strides = array<i32>} : memref<16x8xf32, #tpu.memory_space<vmem>>, vector<16x8xf32>,
    return
  }
  func.func @transform_0(%arg0: i32) -> (i32, i32) {
    %c0_i32 = arith.constant 0 : i32
    %c0_i32_0 = arith.constant 0 : i32
    return %arg0, %c0_i32 : i32, i32
  }
  func.func @transform_1(%arg0: i32) -> (i32, i32) {
    %c0_i32 = arith.constant 0 : i32
    %c0_i32_0 = arith.constant 0 : i32
    %c0_i32_1 = arith.constant 0 : i32
    return %c0_i32, %c0_i32_0 : i32, i32
  }
  func.func @transform_2(%arg0: i32) -> (i32, i32) {
    %c0_i32 = arith.constant 0 : i32
    %c0_i32_0 = arith.constant 0 : i32
    %c0_i32_1 = arith.constant 0 : i32
    return %c0_i32, %c0_i32_0 : i32, i32
  }
  func.func @transform_3(%arg0: i32) -> (i32, i32, i32) {
    %c0_i32 = arith.constant 0 : i32
    %c0_i32_0 = arith.constant 0 : i32
    %c0_i32_1 = arith.constant 0 : i32
    %c0_i32_2 = arith.constant 0 : i32
    return %c0_i32, %c0_i32_0, %c0_i32_1 : i32, i32, i32
  }
  func.func @transform_4(%arg0: i32) -> (i32, i32, i32) {
    %c0_i32 = arith.constant 0 : i32
    %c0_i32_0 = arith.constant 0 : i32
    %c0_i32_1 = arith.constant 0 : i32
    %c0_i32_2 = arith.constant 0 : i32
    return %c0_i32, %c0_i32_0, %c0_i32_1 : i32, i32, i32
  }
  func.func @transform_5(%arg0: i32) -> (i32, i32) {
    %c0_i32 = arith.constant 0 : i32
    %c0_i32_0 = arith.constant 0 : i32
    %c0_i32_1 = arith.constant 0 : i32
    return %c0_i32, %c0_i32_0 : i32, i32
  }
  func.func @transform_6(%arg0: i32) -> (i32, i32) {
    %c0_i32 = arith.constant 0 : i32
    %c0_i32_0 = arith.constant 0 : i32
    %c0_i32_1 = arith.constant 0 : i32
    return %c0_i32, %c0_i32_0 : i32, i32
  }
  func.func @transform_7(%arg0: i32) -> (i32, i32) {
    %c0_i32 = arith.constant 0 : i32
    %c0_i32_0 = arith.constant 0 : i32
    return %arg0, %c0_i32 : i32, i32
  }
}

</mosaic_0001>

<bundles_post_ra>
// kernel: tpu_custom_call.1
= control target key start
LH: loop header
LB: loop body
LE: loop exit
PB: predicated region body
PF: predicated region fallthrough
CT: control target
= control target key end

     0   :  { %12 = vsyncpa [#allocation3], 0  ;;  %s2635_s0 = inlined_call_operand.vmem [shape: bf16[32,208], index: 0, kind: input, shape index: {}]   ;;  %s2636_s1 = inlined_call_operand.hbm [shape: bf16[208,256], index: 1, kind: input, shape index: {}]   ;;  %s2637_s2 = inlined_call_operand.vmem [shape: f32[1,256], index: 2, kind: input, shape index: {}]   ;;  %s2638_s3 = inlined_call_operand.hbm [shape: bf16[3,256,256], index: 3, kind: input, shape index: {}]   ;;  %s2639_s4 = inlined_call_operand.vmem [shape: f32[3,1,256], index: 4, kind: input, shape index: {}]   ;;  %s2640_s5 = inlined_call_operand.vmem [shape: bf16[256,8], index: 5, kind: input, shape index: {}]   ;;  %s2641_s6 = inlined_call_operand.vmem [shape: f32[1,8], index: 6, kind: input, shape index: {}]   ;;  %s2642_s7 = inlined_call_operand.vmem [shape: f32[32,8], index: 7, kind: output, shape index: {}]  }
   0x1   :  { %13 = vsyncpa [#allocation5], 0  ;;  %s2509_s24 = smov 0  }
   0x2 LB: > { %s213_s27 = sshll.u32 %s2636_s1, 4  ;;  %s1626_s28 = sadd.s32 4294967295, %s2463_s24   ;;  %s2463_s24 = sphi %s2509_s24, %s19_s24   ;;  %s214_s27 = int_to_ptr.hbm [resolvable:$true] %s213_s27 }
   0x3   : > { %p1628_p0 = scmp.ge.s32.totalorder %s2463_s24, 1  ;;  %p202_p1 = scmp.lt.s32.totalorder %s2463_s24, 3 }
   0x4   : > { %p2520_p2 = scmp.eq.s32.totalorder %s1626_s28, 0  ;;  %s2465_s8 = smov [#allocation2]  }
   0x5   : > { %p2524_p3 = pnand %p1628_p0, %p202_p1  ;;  %s215_s9 = sshll.u32 %s2465_s8, 4  ;;  %s216_s9 = int_to_ptr.vmem [resolvable:$true] %s215_s9 }
   0x6   : > { %s230_s12 = sshll.u32 %s2638_s3, 4  ;;  %s2466_s13 = smov [#allocation4]   ;;  %s231_s12 = int_to_ptr.hbm [resolvable:$true] %s230_s12 }
   0x7   : > { %p2357_p4 = pneg %p2524_p3  ;;  %s232_s14 = sshll.u32 %s2466_s13, 4  ;;  %s233_s14 = int_to_ptr.vmem [resolvable:$true] %s232_s14 }
   0x8   : > { %s2467_s15 = smov 128   ;;  %s2468_s16 = smov 8  }
   0x9   : > { %p2358_p5 = pnand %p2520_p2, %p2357_p4  ;;  %267 = sbr.rel (%p2524_p3) target bundleno = 815 (0x32f), region = 48 }
   0xb   : > { %2360 = dma.hbm_to_vmem [thread:$0]  (!%p2358_p5), %s214_s27, 3328, %s216_s9, [#allocation3], %s2467_s15, %s2467_s15, %s2468_s16  }
   0xc   : > { %2363 = dma.hbm_to_vmem [thread:$0]  (!%p2358_p5), %s231_s12, 12288, %s233_s14, [#allocation5], %s2467_s15, %s2467_s15, %s2468_s16  }
   0xe   : > { %2454 = dma.done.wait (%p2520_p2), [#allocation3], 3328  }
   0xf   : > { %2456 = vsyncadd (%p2520_p2), [#allocation3], 4294963968 }
  0x10   : > { %2458 = dma.done.wait (%p2520_p2), [#allocation5], 12288  }
  0x11   : > { %2460 = vsyncadd (%p2520_p2), [#allocation5], 4294955008  ;;  %s1635_s17 = sshll.u32 %s1626_s28, 1  ;;  %v1706_v0 = vld [vmem:[#allocation2 + $0x70] sm:$0xf]  ;;  %vm493_vm0 = vcmask 654336  }
  0x12   : > { %p307_p6 = scmp.lt.s32.totalorder %s1635_s17, 3  ;;  %v2226_v1 = vld [vmem:[#allocation2 + $0x74] sm:$0xf0]  ;;  %v2225_v2 = vld [vmem:[#allocation2 + $0x74] sm:$0xf]  ;;  %vm1545_vm5 = vcmask 64512  }
  0x13   : > { %v1707_v3 = vor.u32 %v2226_v1, %v1706_v0  ;;  %v1708_v4 = vld [vmem:[#allocation2 + $0x78] sm:$0xf0]  ;;  %v1698_v5 = vld [vmem:[#allocation2 + $0x60] sm:$0xf]  ;;  %v2224_v6 = vld [vmem:[#allocation2 + $0x64] sm:$0xf0] }
  0x14   : > { %v1711_v7 = vor.u32 %v2225_v2, %v1708_v4  ;;  %v2223_v8 = vld [vmem:[#allocation2 + $0x64] sm:$0xf]  ;;  %v1700_v9 = vld [vmem:[#allocation2 + $0x68] sm:$0xf0]  ;;  %v1699_v11 = vor.u32 %v2224_v6, %v1698_v5  ;;  %v1690_v15 = vld [vmem:[#allocation2 + $0x50] sm:$0xf] }
  0x15   : > { %v2235_v10 = vld [vmem:[#allocation2 + $0xc4] sm:$0xf]  ;;  %497 = vmatpush.bf16.msra.mxu0 %v1707_v3  ;;  %v1748_v12 = vld [vmem:[#allocation2 + $0xc8] sm:$0xf0]  ;;  %v1703_v13 = vor.u32 %v2223_v8, %v1700_v9  ;;  %v2222_v16 = vld [vmem:[#allocation2 + $0x54] sm:$0xf0] }
  0x16   : > { %525 = vmatpush.bf16.msra.mxu2 %v1711_v7  ;;  %v1751_v14 = vor.u32 %v2235_v10, %v1748_v12  ;;  %v2233_v17 = vld [vmem:[#allocation2 + $0xb4] sm:$0xf]  ;;  %v1692_v19 = vld [vmem:[#allocation2 + $0x58] sm:$0xf0]  ;;  %v1746_v22 = vld [vmem:[#allocation2 + $0xc0] sm:$0xf]  ;;  %v1691_v23 = vor.u32 %v2222_v16, %v1690_v15 }
  0x17   : > { %v2221_v18 = vld [vmem:[#allocation2 + $0x54] sm:$0xf]  ;;  %v1740_v20 = vld [vmem:[#allocation2 + $0xb8] sm:$0xf0]  ;;  %s2646_s17 = smov (!%p307_p6, %s1635_s17), 3 }
  0x18   : > { %542 = vmatpush.bf16.msra.mxu3 %v1751_v14  ;;  %v1743_v21 = vor.u32 %v2233_v17, %v1740_v20  ;;  %v2236_v24 = vld [vmem:[#allocation2 + $0xc4] sm:$0xf0]  ;;  %v2231_v25 = vld [vmem:[#allocation2 + $0xa4] sm:$0xf]  ;;  %v1732_v26 = vld [vmem:[#allocation2 + $0xa8] sm:$0xf0]  ;;  %v1695_v27 = vor.u32 %v2221_v18, %v1692_v19 }
  0x19   : > { %498 = vmatpush.bf16.msra.mxu0 %v1699_v11  ;;  %v1682_v28 = vld [vmem:[#allocation2 + $0x40] sm:$0xf]  ;;  %v2220_v29 = vld [vmem:[#allocation2 + $0x44] sm:$0xf0]  ;;  %v2219_v30 = vld [vmem:[#allocation2 + $0x44] sm:$0xf]  ;;  %v1747_v31 = vor.u32 %v2236_v24, %v1746_v22  ;;  %v1735_v35 = vor.u32 %v2231_v25, %v1732_v26 }
  0x1a   : > { %526 = vmatpush.bf16.msra.mxu2 %v1703_v13  ;;  %v1684_v32 = vld [vmem:[#allocation2 + $0x48] sm:$0xf0]  ;;  %v1738_v33 = vld [vmem:[#allocation2 + $0xb0] sm:$0xf]  ;;  %v2234_v34 = vld [vmem:[#allocation2 + $0xb4] sm:$0xf0]  ;;  %v1683_v37 = vor.u32 %v2220_v29, %v1682_v28 }
  0x1b   : > { %514 = vmatpush.bf16.msra.mxu1 %v1747_v31  ;;  %v1739_v36 = vor.u32 %v2234_v34, %v1738_v33  ;;  %s2208_s18 = sshll.u32 %s2646_s17, 3  ;;  %v1674_v38 = vld [vmem:[#allocation2 + $0x30] sm:$0xf]  ;;  %v2229_v39 = vld [vmem:[#allocation2 + $0x94] sm:$0xf]  ;;  %v1687_v41 = vor.u32 %v2219_v30, %v1684_v32 }
  0x1c   : > { %543 = vmatpush.bf16.msra.mxu3 %v1743_v21  ;;  %v1724_v40 = vld [vmem:[#allocation2 + $0x98] sm:$0xf0]  ;;  %v2218_v42 = vld [vmem:[#allocation2 + $0x34] sm:$0xf0]  ;;  %v1730_v43 = vld [vmem:[#allocation2 + $0xa0] sm:$0xf]  ;;  %s2554_s21 = scalar_lea.vmem %s2635_s0, %s2208_s18  ;;  %s317_s27 = scalar_lea.vmem %s2642_s7, %s2208_s18 }
  0x1d   : > { %499 = vmatpush.bf16.msra.mxu0 %v1691_v23  ;;  %v2232_v44 = vld [vmem:[#allocation2 + $0xa4] sm:$0xf0]  ;;  %v2217_v45 = vld [vmem:[#allocation2 + $0x34] sm:$0xf]  ;;  %v1676_v46 = vld [vmem:[#allocation2 + $0x38] sm:$0xf0]  ;;  %v1727_v47 = vor.u32 %v2229_v39, %v1724_v40  ;;  %v1675_v50 = vor.u32 %v2218_v42, %v1674_v38 }
  0x1e   : > { %527 = vmatpush.bf16.msra.mxu2 %v1695_v27  ;;  %v1731_v48 = vor.u32 %v2232_v44, %v1730_v43  ;;  %v2227_v49 = vld [vmem:[#allocation2 + $0x84] sm:$0xf]  ;;  %v1716_v51 = vld [vmem:[#allocation2 + $0x88] sm:$0xf0]  ;;  %v1722_v52 = vld [vmem:[#allocation2 + $0x90] sm:$0xf]  ;;  %v1679_v54 = vor.u32 %v2217_v45, %v1676_v46 }
  0x1f   : > { %515 = vmatpush.bf16.msra.mxu1 %v1739_v36  ;;  %v2230_v53 = vld [vmem:[#allocation2 + $0x94] sm:$0xf0]  ;;  %v1666_v55 = vld [vmem:[#allocation2 + $0x20] sm:$0xf]  ;;  %v2216_v56 = vld [vmem:[#allocation2 + $0x24] sm:$0xf0]  ;;  %v1719_v59 = vor.u32 %v2227_v49, %v1716_v51 }
  0x20   : > { %544 = vmatpush.bf16.msra.mxu3 %v1735_v35  ;;  %v2215_v57 = vld [vmem:[#allocation2 + $0x24] sm:$0xf]  ;;  %v1668_v58 = vld [vmem:[#allocation2 + $0x28] sm:$0xf0]  ;;  %v1658_v60 = vld [vmem:[#allocation2 + $0x10] sm:$0xf]  ;;  %v1723_v63 = vor.u32 %v2230_v53, %v1722_v52  ;;  %v1667_v0 = vor.u32 %v2216_v56, %v1666_v55 }
  0x21   : > { %500 = vmatpush.bf16.msra.mxu0 %v1683_v37  ;;  %v2209_v61 = vld [vmem:[%s2554_s21 + $0x4] sm:$0xf]  ;;  %v1644_v62 = vld [vmem:[%s2554_s21 + $0x8] sm:$0xf0]  ;;  %v2214_v1 = vld [vmem:[#allocation2 + $0x14] sm:$0xf0]  ;;  %v1671_v4 = vor.u32 %v2215_v57, %v1668_v58 }
  0x22   : > { %528 = vmatpush.bf16.msra.mxu2 %v1687_v41  ;;  %v1714_v2 = vld [vmem:[#allocation2 + $0x80] sm:$0xf]  ;;  %v2228_v3 = vld [vmem:[#allocation2 + $0x84] sm:$0xf0]  ;;  %v2213_v5 = vld [vmem:[#allocation2 + $0x14] sm:$0xf]  ;;  %v1647_v9 = vor.u32 %v2209_v61, %v1644_v62  ;;  %v1659_v15 = vor.u32 %v2214_v1, %v1658_v60 }
  0x23   : > { %516 = vmatpush.bf16.msra.mxu1 %v1731_v48  ;;  %v1812_v6 = vld [vmem:[#allocation4 + $0x70] sm:$0xf]  ;;  %v2252_v7 = vld [vmem:[#allocation4 + $0x74] sm:$0xf0]  ;;  %v1660_v8 = vld [vmem:[#allocation2 + $0x18] sm:$0xf0]  ;;  %v1715_v13 = vor.u32 %v2228_v3, %v1714_v2 }
  0x24   : > { %545 = vmatpush.bf16.msra.mxu3 %v1727_v47  ;;  %v1876_v10 = vld [vmem:[#allocation4 + $0xf0] sm:$0xf]  ;;  %v2268_v11 = vld [vmem:[#allocation4 + $0xf4] sm:$0xf0]  ;;  %v2211_v17 = vld [vmem:[#allocation2 + $0x4] sm:$0xf]  ;;  %v1813_v18 = vor.u32 %v2252_v7, %v1812_v6  ;;  %v1663_v20 = vor.u32 %v2213_v5, %v1660_v8 }
  0x25   : > { %501 = vmatpush.bf16.msra.mxu0 %v1675_v50  ;;  %v1650_v12 = vld [vmem:[#allocation2] sm:$0xf]  ;;  %v1877_v14 = vor.u32 %v2268_v11, %v1876_v10  ;;  %v2212_v16 = vld [vmem:[#allocation2 + $0x4] sm:$0xf0]  ;;  %v1804_v19 = vld [vmem:[#allocation4 + $0x60] sm:$0xf] }
  0x26   : > { %529 = vmatpush.bf16.msra.mxu2 %v1679_v54  ;;  %v2250_v21 = vld [vmem:[#allocation4 + $0x64] sm:$0xf0]  ;;  %v1868_v22 = vld [vmem:[#allocation4 + $0xe0] sm:$0xf]  ;;  %v1652_v24 = vld [vmem:[#allocation2 + $0x8] sm:$0xf0]  ;;  %v1651_v30 = vor.u32 %v2212_v16, %v1650_v12 }
  0x27   : > { %517 = vmatpush.bf16.msra.mxu1 %v1723_v63  ;;  %v2266_v23 = vld [vmem:[#allocation4 + $0xe4] sm:$0xf0]  ;;  %v2251_v25 = vld [vmem:[#allocation4 + $0x74] sm:$0xf]  ;;  %v1814_v26 = vld [vmem:[#allocation4 + $0x78] sm:$0xf0]  ;;  %v1805_v33 = vor.u32 %v2250_v21, %v1804_v19  ;;  %v1655_v34 = vor.u32 %v2211_v17, %v1652_v24 }
  0x28   : > { %546 = vmatpush.bf16.msra.mxu3 %v1719_v59  ;;  %v1869_v27 = vor.u32 %v2266_v23, %v1868_v22  ;;  %v2267_v28 = vld [vmem:[#allocation4 + $0xf4] sm:$0xf]  ;;  %v1878_v29 = vld [vmem:[#allocation4 + $0xf8] sm:$0xf0]  ;;  %v1642_v31 = vld [vmem:[%s2554_s21] sm:$0xf]  ;;  %v1817_v35 = vor.u32 %v2251_v25, %v1814_v26 }
  0x29   : > { %502 = vmatpush.bf16.msra.mxu0 %v1667_v0  ;;  %v2210_v32 = vld [vmem:[%s2554_s21 + $0x4] sm:$0xf0]  ;;  %v1796_v36 = vld [vmem:[#allocation4 + $0x50] sm:$0xf]  ;;  %v2249_v38 = vld [vmem:[#allocation4 + $0x64] sm:$0xf]  ;;  %v1881_v40 = vor.u32 %v2267_v28, %v1878_v29 }
  0x2a   : > { %530 = vmatpush.bf16.msra.mxu2 %v1671_v4  ;;  %v2248_v37 = vld [vmem:[#allocation4 + $0x54] sm:$0xf0]  ;;  %v1806_v39 = vld [vmem:[#allocation4 + $0x68] sm:$0xf0]  ;;  %v1643_v41 = vor.u32 %v2210_v32, %v1642_v31  ;;  %v2265_v42 = vld [vmem:[#allocation4 + $0xe4] sm:$0xf] }
  0x2b   : > { %1753 = vmatmul.msk.bf16.vlgmr.msra.gmra.mxu3 %vm493_vm0, %v1647_v9  ;;  %518 = vmatpush.bf16.msra.mxu1 %v1715_v13  ;;  %v1870_v43 = vld [vmem:[#allocation4 + $0xe8] sm:$0xf0]  ;;  %v1797_v44 = vor.u32 %v2248_v37, %v1796_v36  ;;  %v1809_v45 = vor.u32 %v2249_v38, %v1806_v39  ;;  %v1788_v46 = vld [vmem:[#allocation4 + $0x40] sm:$0xf]  ;;  %v2246_v47 = vld [vmem:[#allocation4 + $0x44] sm:$0xf0] }
  0x2c   : > { %771 = vmatpush.bf16.msrb.mxu3 %v1877_v14  ;;  %v2247_v48 = vld [vmem:[#allocation4 + $0x54] sm:$0xf]  ;;  %v1798_v49 = vld [vmem:[#allocation4 + $0x58] sm:$0xf0]  ;;  %v1873_v50 = vor.u32 %v2265_v42, %v1870_v43  ;;  %v1789_v51 = vor.u32 %v2246_v47, %v1788_v46  ;;  %v2245_v53 = vld [vmem:[#allocation4 + $0x44] sm:$0xf] }
  0x2d   : > { %503 = vmatpush.bf16.msra.mxu0 %v1659_v15  ;;  %v1801_v52 = vor.u32 %v2247_v48, %v1798_v49  ;;  %v1790_v54 = vld [vmem:[#allocation4 + $0x48] sm:$0xf0]  ;;  %v1860_v56 = vld [vmem:[#allocation4 + $0xd0] sm:$0xf]  ;;  %v2264_v57 = vld [vmem:[#allocation4 + $0xd4] sm:$0xf0] }
  0x2e   : > { %531 = vmatpush.bf16.msra.mxu2 %v1663_v20  ;;  %1752 = vmatmul.msk.bf16.vlgmr.msra.gmra.mxu1 %vm493_vm0, %v1647_v9  ;;  %v1793_v55 = vor.u32 %v2245_v53, %v1790_v54  ;;  %v2263_v58 = vld [vmem:[#allocation4 + $0xd4] sm:$0xf]  ;;  %v1861_v59 = vor.u32 %v2264_v57, %v1860_v56  ;;  %v1862_v60 = vld [vmem:[#allocation4 + $0xd8] sm:$0xf0]  ;;  %v1780_v62 = vld [vmem:[#allocation4 + $0x30] sm:$0xf] }
  0x2f   : > { %757 = vmatpush.bf16.msrb.mxu1 %v1813_v18  ;;  %v1865_v61 = vor.u32 %v2263_v58, %v1862_v60  ;;  %v2244_v63 = vld [vmem:[#allocation4 + $0x34] sm:$0xf0]  ;;  %v2243_v0 = vld [vmem:[#allocation4 + $0x34] sm:$0xf]  ;;  %v1782_v2 = vld [vmem:[#allocation4 + $0x38] sm:$0xf0] }
  0x30   : > { %772 = vmatpush.bf16.msrb.mxu3 %v1869_v27  ;;  %v1781_v1 = vor.u32 %v2244_v63, %v1780_v62  ;;  %v1785_v3 = vor.u32 %v2243_v0, %v1782_v2  ;;  %v1852_v4 = vld [vmem:[#allocation4 + $0xc0] sm:$0xf]  ;;  %v2262_v5 = vld [vmem:[#allocation4 + $0xc4] sm:$0xf0]  ;;  %v2261_v6 = vld [vmem:[#allocation4 + $0xc4] sm:$0xf] }
  0x31   : > { %504 = vmatpush.bf16.msra.mxu0 %v1651_v30  ;;  %v1853_v7 = vor.u32 %v2262_v5, %v1852_v4  ;;  %v1854_v8 = vld [vmem:[#allocation4 + $0xc8] sm:$0xf0]  ;;  %v1772_v10 = vld [vmem:[#allocation4 + $0x20] sm:$0xf]  ;;  %v2242_v11 = vld [vmem:[#allocation4 + $0x24] sm:$0xf0] }
  0x32   : > { %532 = vmatpush.bf16.msra.mxu2 %v1655_v34  ;;  %v1857_v9 = vor.u32 %v2261_v6, %v1854_v8  ;;  %v2241_v12 = vld [vmem:[#allocation4 + $0x24] sm:$0xf]  ;;  %v1773_v13 = vor.u32 %v2242_v11, %v1772_v10  ;;  %v1774_v14 = vld [vmem:[#allocation4 + $0x28] sm:$0xf0]  ;;  %v1844_v16 = vld [vmem:[#allocation4 + $0xb0] sm:$0xf] }
  0x33   : > { %758 = vmatpush.bf16.msrb.mxu1 %v1805_v33  ;;  %v1777_v15 = vor.u32 %v2241_v12, %v1774_v14  ;;  %v2260_v17 = vld [vmem:[#allocation4 + $0xb4] sm:$0xf0]  ;;  %v2259_v18 = vld [vmem:[#allocation4 + $0xb4] sm:$0xf]  ;;  %v1846_v20 = vld [vmem:[#allocation4 + $0xb8] sm:$0xf0] }
  0x34   : > { %505 = vmatmul.bf16.vlgmr.msra.gmra.mxu0 %v1643_v41  ;;  %773 = vmatpush.bf16.msrb.mxu3 %v1861_v59  ;;  %v1845_v19 = vor.u32 %v2260_v17, %v1844_v16  ;;  %v1849_v21 = vor.u32 %v2259_v18, %v1846_v20  ;;  %v1764_v22 = vld [vmem:[#allocation4 + $0x10] sm:$0xf]  ;;  %v2240_v23 = vld [vmem:[#allocation4 + $0x14] sm:$0xf0]  ;;  %v2239_v24 = vld [vmem:[#allocation4 + $0x14] sm:$0xf] }
  0x35   : > { %785 = vmatpush.bf16.msrb.mxu0 %v1817_v35  ;;  %533 = vmatmul.bf16.vlgmr.msra.gmra.mxu2 %v1643_v41  ;;  %v1765_v25 = vor.u32 %v2240_v23, %v1764_v22  ;;  %v1766_v26 = vld [vmem:[#allocation4 + $0x18] sm:$0xf0]  ;;  %v1836_v28 = vld [vmem:[#allocation4 + $0xa0] sm:$0xf]  ;;  %v2258_v29 = vld [vmem:[#allocation4 + $0xa4] sm:$0xf0] }
  0x36   : > { %799 = vmatpush.bf16.msrb.mxu2 %v1881_v40  ;;  %v1769_v27 = vor.u32 %v2239_v24, %v1766_v26  ;;  %v2257_v30 = vld [vmem:[#allocation4 + $0xa4] sm:$0xf]  ;;  %v1837_v31 = vor.u32 %v2258_v29, %v1836_v28  ;;  %v1838_v32 = vld [vmem:[#allocation4 + $0xa8] sm:$0xf0]  ;;  %v1756_v34 = vld [vmem:[#allocation4] sm:$0xf] }
  0x37   : > { %759 = vmatpush.bf16.msrb.mxu1 %v1797_v44  ;;  %v1841_v33 = vor.u32 %v2257_v30, %v1838_v32  ;;  %v2238_v35 = vld [vmem:[#allocation4 + $0x4] sm:$0xf0]  ;;  %v2237_v36 = vld [vmem:[#allocation4 + $0x4] sm:$0xf]  ;;  %v1758_v38 = vld [vmem:[#allocation4 + $0x8] sm:$0xf0] }
  0x38   : > { %774 = vmatpush.bf16.msrb.mxu3 %v1853_v7  ;;  %v1757_v37 = vor.u32 %v2238_v35, %v1756_v34  ;;  %v1761_v39 = vor.u32 %v2237_v36, %v1758_v38  ;;  %v1828_v40 = vld [vmem:[#allocation4 + $0x90] sm:$0xf]  ;;  %v2256_v41 = vld [vmem:[#allocation4 + $0x94] sm:$0xf0]  ;;  %v2255_v42 = vld [vmem:[#allocation4 + $0x94] sm:$0xf] }
  0x39   : > { %786 = vmatpush.bf16.msrb.mxu0 %v1809_v45  ;;  %v1829_v43 = vor.u32 %v2256_v41, %v1828_v40  ;;  %v1830_v44 = vld [vmem:[#allocation4 + $0x98] sm:$0xf0]  ;;  %v1820_v46 = vld [vmem:[#allocation4 + $0x80] sm:$0xf]  ;;  %v2254_v47 = vld [vmem:[#allocation4 + $0x84] sm:$0xf0] }
  0x3a   : > { %800 = vmatpush.bf16.msrb.mxu2 %v1873_v50  ;;  %v1833_v45 = vor.u32 %v2255_v42, %v1830_v44  ;;  %v2253_v48 = vld [vmem:[#allocation4 + $0x84] sm:$0xf]  ;;  %v1821_v49 = vor.u32 %v2254_v47, %v1820_v46  ;;  %v1822_v50 = vld [vmem:[#allocation4 + $0x88] sm:$0xf0]  ;;  %v2284_v53 = vld [vmem:[#allocation4 + $0x174] sm:$0xf0] }
  0x3b   : > { %760 = vmatpush.bf16.msrb.mxu1 %v1789_v51  ;;  %v1825_v51 = vor.u32 %v2253_v48, %v1822_v50  ;;  %v2005_v54 = vld [vmem:[#allocation4 + $0x1f0] sm:$0xf]  ;;  %v2300_v56 = vld [vmem:[#allocation4 + $0x1f4] sm:$0xf0]  ;;  %v2283_v57 = vld [vmem:[#allocation4 + $0x174] sm:$0xf] }
  0x3c   : > { %775 = vmatpush.bf16.msrb.mxu3 %v1845_v19  ;;  %v1943_v58 = vld [vmem:[#allocation4 + $0x178] sm:$0xf0]  ;;  %v2006_v59 = vor.u32 %v2300_v56, %v2005_v54  ;;  %v348_v0 = vld [vmem:[%s2637_s2] sm:$0x3]  ;;  %v2282_v26 = vld [vmem:[#allocation4 + $0x164] sm:$0xf0] }
  0x3d   : > { %787 = vmatpush.bf16.msrb.mxu0 %v1801_v52  ;;  %v1941_v52 = vld [vmem:[#allocation4 + $0x170] sm:$0xf]  ;;  %v1946_v60 = vor.u32 %v2283_v57, %v1943_v58  ;;  %v2007_v62 = vld [vmem:[#allocation4 + $0x1f8] sm:$0xf0]  ;;  %v350_v2 = vperm.slane %v348_v0, 0  ;;  %v351_v8 = vperm.slane %v348_v0, 1 }
  0x3e   : > { %801 = vmatpush.bf16.msrb.mxu2 %v1865_v61  ;;  %v2299_v61 = vld [vmem:[#allocation4 + $0x1f4] sm:$0xf]  ;;  %v2298_v29 = vld [vmem:[#allocation4 + $0x1e4] sm:$0xf0]  ;;  %v2281_v30 = vld [vmem:[#allocation4 + $0x164] sm:$0xf] }
  0x3f   : > { %761 = vmatpush.bf16.msrb.mxu1 %v1781_v1  ;;  %v2010_v63 = vor.u32 %v2299_v61, %v2007_v62  ;;  %v2297_v34 = vld [vmem:[#allocation4 + $0x1e4] sm:$0xf]  ;;  %v1999_v35 = vld [vmem:[#allocation4 + $0x1e8] sm:$0xf0]  ;;  %v2280_v38 = vld [vmem:[#allocation4 + $0x154] sm:$0xf0] }
  0x40   : > { %776 = vmatpush.bf16.msrb.mxu3 %v1837_v31  ;;  %v1935_v31 = vld [vmem:[#allocation4 + $0x168] sm:$0xf0]  ;;  %v2002_v36 = vor.u32 %v2297_v34, %v1999_v35  ;;  %v1989_v40 = vld [vmem:[#allocation4 + $0x1d0] sm:$0xf]  ;;  %v2296_v41 = vld [vmem:[#allocation4 + $0x1d4] sm:$0xf0] }
  0x41   : > { %788 = vmatpush.bf16.msrb.mxu0 %v1793_v55  ;;  %v1942_v55 = vor.u32 %v2284_v53, %v1941_v52  ;;  %v2279_v42 = vld [vmem:[#allocation4 + $0x154] sm:$0xf]  ;;  %v1927_v44 = vld [vmem:[#allocation4 + $0x158] sm:$0xf0]  ;;  %v2278_v50 = vld [vmem:[#allocation4 + $0x144] sm:$0xf0] }
  0x42   : > { %802 = vmatpush.bf16.msrb.mxu2 %v1857_v9  ;;  %v1991_v46 = vld [vmem:[#allocation4 + $0x1d8] sm:$0xf0]  ;;  %v1930_v47 = vor.u32 %v2279_v42, %v1927_v44  ;;  %v2294_v53 = vld [vmem:[#allocation4 + $0x1c4] sm:$0xf0]  ;;  %v2277_v54 = vld [vmem:[#allocation4 + $0x144] sm:$0xf] }
  0x43   : > { %762 = vmatpush.bf16.msrb.mxu1 %v1773_v13  ;;  %v2293_v58 = vld [vmem:[#allocation4 + $0x1c4] sm:$0xf]  ;;  %v1909_v61 = vld [vmem:[#allocation4 + $0x130] sm:$0xf]  ;;  %v2276_v62 = vld [vmem:[#allocation4 + $0x134] sm:$0xf0] }
  0x44   : > { %777 = vmatpush.bf16.msrb.mxu3 %v1829_v43  ;;  %v1990_v43 = vor.u32 %v2296_v41, %v1989_v40  ;;  %v1910_v0 = vor.u32 %v2276_v62, %v1909_v61  ;;  %v2270_v34 = vld [vmem:[#allocation4 + $0x104] sm:$0xf0]  ;;  %v1949_v35 = vld [vmem:[#allocation4 + $0x180] sm:$0xf]  ;;  %v2285_v42 = vld [vmem:[#allocation4 + $0x184] sm:$0xf] }
  0x45   : > { %789 = vmatpush.bf16.msrb.mxu0 %v1785_v3  ;;  %v2313_v62 = vld [vmem:[#allocation4 + $0x264] sm:$0xf] }
  0x46   : > { %803 = vmatpush.bf16.msrb.mxu2 %v1849_v21 }
  0x47   : > { %763 = vmatpush.bf16.msrb.mxu1 %v1765_v25  ;;  %v1933_v25 = vld [vmem:[#allocation4 + $0x160] sm:$0xf] }
  0x48   : > { %778 = vmatpush.bf16.msrb.mxu3 %v1821_v49  ;;  %v1934_v28 = vor.u32 %v2282_v26, %v1933_v25  ;;  %v1917_v49 = vld [vmem:[#allocation4 + $0x140] sm:$0xf]  ;;  %v2288_v25 = vld [vmem:[#allocation4 + $0x194] sm:$0xf0]  ;;  %v2271_v26 = vld [vmem:[#allocation4 + $0x114] sm:$0xf] }
  0x49   : > { %790 = vmatpush.bf16.msrb.mxu0 %v1777_v15  ;;  %v1918_v52 = vor.u32 %v2278_v50, %v1917_v49  ;;  %v2332_v49 = vld [vmem:[#allocation4 + $0x2f4] sm:$0xf0]  ;;  %v2315_v50 = vld [vmem:[#allocation4 + $0x274] sm:$0xf] }
  0x4a   : > { %804 = vmatpush.bf16.msrb.mxu2 %v1841_v33  ;;  %v1938_v33 = vor.u32 %v2281_v30, %v1935_v31  ;;  %v2287_v30 = vld [vmem:[#allocation4 + $0x194] sm:$0xf]  ;;  %v1959_v31 = vld [vmem:[#allocation4 + $0x198] sm:$0xf0] }
  0x4b   : > { %764 = vmatpush.bf16.msrb.mxu1 %v1757_v37  ;;  %v1925_v37 = vld [vmem:[#allocation4 + $0x150] sm:$0xf] }
  0x4c   : > { %1033 = vmatpush.bf16.msra.mxu3 %v2006_v59  ;;  %v1983_v59 = vld [vmem:[#allocation4 + $0x1c8] sm:$0xf0] }
  0x4d   : > { %791 = vmatpush.bf16.msrb.mxu0 %v1769_v27  ;;  %v1997_v27 = vld [vmem:[#allocation4 + $0x1e0] sm:$0xf] }
  0x4e   : > { %805 = vmatpush.bf16.msrb.mxu2 %v1833_v45  ;;  %v1998_v32 = vor.u32 %v2298_v29, %v1997_v27  ;;  %v2295_v45 = vld [vmem:[#allocation4 + $0x1d4] sm:$0xf]  ;;  %v1895_v27 = vld [vmem:[#allocation4 + $0x118] sm:$0xf0] }
  0x4f   : > { %1019 = vmatpush.bf16.msra.mxu1 %v1942_v55  ;;  %v1994_v48 = vor.u32 %v2295_v45, %v1991_v46  ;;  %v1919_v55 = vld [vmem:[#allocation4 + $0x148] sm:$0xf0]  ;;  %v1898_v29 = vor.u32 %v2271_v26, %v1895_v27  ;;  %v2070_v45 = vld [vmem:[#allocation4 + $0x270] sm:$0xf]  ;;  %v2316_v46 = vld [vmem:[#allocation4 + $0x274] sm:$0xf0] }
  0x50   : > { %1034 = vmatpush.bf16.msra.mxu3 %v1998_v32  ;;  %v1922_v57 = vor.u32 %v2277_v54, %v1919_v55  ;;  %v1962_v32 = vor.u32 %v2287_v30, %v1959_v31  ;;  %v2331_v54 = vld [vmem:[#allocation4 + $0x2f4] sm:$0xf]  ;;  %v2136_v55 = vld [vmem:[#allocation4 + $0x2f8] sm:$0xf0] }
  0x51   : > { %792 = vmatpush.bf16.msrb.mxu0 %v1761_v39  ;;  %v1926_v39 = vor.u32 %v2280_v38, %v1925_v37  ;;  %v2286_v37 = vld [vmem:[#allocation4 + $0x184] sm:$0xf0]  ;;  %v2269_v38 = vld [vmem:[#allocation4 + $0x104] sm:$0xf] }
  0x52   : > { %806 = vmatpush.bf16.msrb.mxu2 %v1825_v51  ;;  %v1981_v51 = vld [vmem:[#allocation4 + $0x1c0] sm:$0xf]  ;;  %v1950_v40 = vor.u32 %v2286_v37, %v1949_v35 }
  0x53   : > { %1020 = vmatpush.bf16.msra.mxu1 %v1934_v28  ;;  %v1982_v56 = vor.u32 %v2294_v53, %v1981_v51  ;;  %v2072_v51 = vld [vmem:[#allocation4 + $0x278] sm:$0xf0] }
  0x54   : > { %1035 = vmatpush.bf16.msra.mxu3 %v1990_v43  ;;  %v1951_v43 = vld [vmem:[#allocation4 + $0x188] sm:$0xf0]  ;;  %v2075_v53 = vor.u32 %v2315_v50, %v2072_v51  ;;  %v2325_v50 = vld [vmem:[#allocation4 + $0x2c4] sm:$0xf] }
  0x55   : > { %1047 = vmatpush.bf16.msra.mxu0 %v1946_v60  ;;  %v1986_v60 = vor.u32 %v2293_v58, %v1983_v59  ;;  %v1954_v44 = vor.u32 %v2285_v42, %v1951_v43  ;;  %v2314_v58 = vld [vmem:[#allocation4 + $0x264] sm:$0xf0]  ;;  %v2126_v59 = vld [vmem:[#allocation4 + $0x2e0] sm:$0xf]  ;;  %v2112_v51 = vld [vmem:[#allocation4 + $0x2c8] sm:$0xf0] }
  0x56   : > { %1061 = vmatpush.bf16.msra.mxu2 %v2010_v63  ;;  %v1973_v63 = vld [vmem:[#allocation4 + $0x1b0] sm:$0xf]  ;;  %v2046_v42 = vld [vmem:[#allocation4 + $0x240] sm:$0xf]  ;;  %v2310_v43 = vld [vmem:[#allocation4 + $0x244] sm:$0xf0] }
  0x57   : > { %1021 = vmatpush.bf16.msra.mxu1 %v1926_v39  ;;  %v1887_v39 = vld [vmem:[#allocation4 + $0x108] sm:$0xf0] }
  0x58   : > { %1036 = vmatpush.bf16.msra.mxu3 %v1982_v56  ;;  %v1890_v41 = vor.u32 %v2269_v38, %v1887_v39  ;;  %v2062_v56 = vld [vmem:[#allocation4 + $0x260] sm:$0xf] }
  0x59   : > { %1048 = vmatpush.bf16.msra.mxu0 %v1938_v33  ;;  %v1885_v33 = vld [vmem:[#allocation4 + $0x100] sm:$0xf]  ;;  %v2063_v61 = vor.u32 %v2314_v58, %v2062_v56  ;;  %v2102_v56 = vld [vmem:[#allocation4 + $0x2b0] sm:$0xf]  ;;  %v2324_v58 = vld [vmem:[#allocation4 + $0x2b4] sm:$0xf0] }
  0x5a   : > { %1062 = vmatpush.bf16.msra.mxu2 %v2002_v36  ;;  %v1886_v36 = vor.u32 %v2270_v34, %v1885_v33 }
  0x5b   : > { %1022 = vmatpush.bf16.msra.mxu1 %v1918_v52 }
  0x5d   : > { %1049 = vmatpush.bf16.msra.mxu0 %v1930_v47  ;;  %v2134_v47 = vld [vmem:[#allocation4 + $0x2f0] sm:$0xf] }
  0x5e   : > { %1063 = vmatpush.bf16.msra.mxu2 %v1994_v48  ;;  %v2071_v48 = vor.u32 %v2316_v46, %v2070_v45  ;;  %v2135_v52 = vor.u32 %v2332_v49, %v2134_v47  ;;  %v2110_v45 = vld [vmem:[#allocation4 + $0x2c0] sm:$0xf]  ;;  %v2326_v46 = vld [vmem:[#allocation4 + $0x2c4] sm:$0xf0]  ;;  %v2309_v47 = vld [vmem:[#allocation4 + $0x244] sm:$0xf] }
  0x5f   : > { %1023 = vmatpush.bf16.msra.mxu1 %v1910_v0  ;;  %v2329_v0 = vld [vmem:[#allocation4 + $0x2e4] sm:$0xf]  ;;  %v2048_v49 = vld [vmem:[#allocation4 + $0x248] sm:$0xf0] }
  0x61   : > { %1050 = vmatpush.bf16.msra.mxu0 %v1922_v57  ;;  %v2139_v57 = vor.u32 %v2331_v54, %v2136_v55  ;;  %v2038_v54 = vld [vmem:[#allocation4 + $0x230] sm:$0xf]  ;;  %v2308_v55 = vld [vmem:[#allocation4 + $0x234] sm:$0xf0] }
  0x62   : > { %1064 = vmatpush.bf16.msra.mxu2 %v1986_v60  ;;  %v2330_v60 = vld [vmem:[#allocation4 + $0x2e4] sm:$0xf0] }
  0xab   : > { %v520_v1 = vpop.f32.mrf.mxu1 }
  0xae   : > { %v548_v5 = vpop.f32.mrf.mxu3 }
  0xb1   : > { %v506_v3 = vpop.f32.mrf.mxu0 }
  0xb2   : > { %v507_v4 = vadd.f32 %v506_v3, %v350_v2  ;;  %v1911_v3 = vld [vmem:[#allocation4 + $0x138] sm:$0xf0] }
  0xb3   : > { %v522_v10 = vpop.f32.mrf.mxu1 }
  0xb4   : > { %v521_v6 = vadd.f32 %v520_v1, %v507_v4  ;;  %v2292_v1 = vld [vmem:[#allocation4 + $0x1b4] sm:$0xf0] }
  0xb5   : > { %v1974_v4 = vor.u32 %v2292_v1, %v1973_v63  ;;  %v2064_v63 = vld [vmem:[#allocation4 + $0x268] sm:$0xf0]  ;;  %v2127_v1 = vor.u32 %v2330_v60, %v2126_v59  ;;  %v2307_v59 = vld [vmem:[#allocation4 + $0x234] sm:$0xf]  ;;  %v2040_v60 = vld [vmem:[#allocation4 + $0x238] sm:$0xf0] }
  0xb6   : > { %v553_v12 = vmax.f32 %v521_v6, 0.0  ;;  %v550_v20 = vpop.f32.mrf.mxu3  ;;  %v2291_v6 = vld [vmem:[#allocation4 + $0x1b4] sm:$0xf] }
  0xb7   : > { %1037 = vmatpush.bf16.msra.mxu3 %v1974_v4  ;;  %v2054_v4 = vld [vmem:[#allocation4 + $0x250] sm:$0xf] }
  0xb8   : > { %v534_v7 = vpop.f32.mrf.mxu2 }
  0xb9   : > { %v508_v9 = vpop.f32.mrf.mxu0  ;;  %v535_v14 = vadd.f32 %v534_v7, %v351_v8  ;;  %v1975_v7 = vld [vmem:[#allocation4 + $0x1b8] sm:$0xf0] }
  0xba   : > { %v509_v11 = vadd.f32 %v508_v9, %v350_v2  ;;  %v2275_v2 = vld [vmem:[#allocation4 + $0x134] sm:$0xf]  ;;  %v1901_v9 = vld [vmem:[#allocation4 + $0x120] sm:$0xf] }
  0xbb   : > { %v549_v18 = vadd.f32 %v548_v5, %v535_v14  ;;  %v1914_v5 = vor.u32 %v2275_v2, %v1911_v3  ;;  %v2273_v14 = vld [vmem:[#allocation4 + $0x124] sm:$0xf]  ;;  %v2067_v2 = vor.u32 %v2313_v62, %v2064_v63  ;;  %v2128_v3 = vld [vmem:[#allocation4 + $0x2e8] sm:$0xf0]  ;;  %v2043_v62 = vor.u32 %v2307_v59, %v2040_v60  ;;  %v2323_v63 = vld [vmem:[#allocation4 + $0x2b4] sm:$0xf] }
  0xbc   : > { %v523_v13 = vadd.f32 %v522_v10, %v509_v11  ;;  %v2274_v10 = vld [vmem:[#allocation4 + $0x124] sm:$0xf0]  ;;  %v1965_v11 = vld [vmem:[#allocation4 + $0x1a0] sm:$0xf] }
  0xbd   : > { %v554_v22 = vmax.f32 %v549_v18, 0.0  ;;  %1051 = vmatpush.bf16.msra.mxu0 %v1914_v5  ;;  %v2289_v18 = vld [vmem:[#allocation4 + $0x1a4] sm:$0xf]  ;;  %v2312_v5 = vld [vmem:[#allocation4 + $0x254] sm:$0xf0] }
  0xbe   : > { %v555_v15 = vmax.f32 %v523_v13, 0.0  ;;  %v2290_v13 = vld [vmem:[#allocation4 + $0x1a4] sm:$0xf0] }
  0xc0   : > { %v590_v16 = vpack.c.bf16 %v555_v15, %v553_v12  ;;  %v536_v17 = vpop.f32.mrf.mxu2  ;;  %v1902_v12 = vor.u32 %v2274_v10, %v1901_v9  ;;  %v1903_v15 = vld [vmem:[#allocation4 + $0x128] sm:$0xf0]  ;;  %v2311_v9 = vld [vmem:[#allocation4 + $0x254] sm:$0xf]  ;;  %v2055_v10 = vor.u32 %v2312_v5, %v2054_v4  ;;  %v2094_v4 = vld [vmem:[#allocation4 + $0x2a0] sm:$0xf] }
  0xc1   : > { %v537_v19 = vadd.f32 %v536_v17, %v351_v8  ;;  %v1978_v8 = vor.u32 %v2291_v6, %v1975_v7  ;;  %v1906_v17 = vor.u32 %v2273_v14, %v1903_v15  ;;  %v2131_v6 = vor.u32 %v2329_v0, %v2128_v3  ;;  %v2118_v7 = vld [vmem:[#allocation4 + $0x2d0] sm:$0xf]  ;;  %v2104_v0 = vld [vmem:[#allocation4 + $0x2b8] sm:$0xf0]  ;;  %v2306_v3 = vld [vmem:[#allocation4 + $0x224] sm:$0xf0] }
  0xc2   : > { %765 = vmatmul.bf16.vlgmr.msrb.gmra.mxu1 %v590_v16  ;;  %793 = vmatmul.bf16.vlgmr.msrb.gmra.mxu0 %v590_v16  ;;  %v1966_v16 = vor.u32 %v2290_v13, %v1965_v11  ;;  %v2056_v11 = vld [vmem:[#allocation4 + $0x258] sm:$0xf0] }
  0xc3   : > { %v551_v21 = vadd.f32 %v550_v20, %v537_v19  ;;  %1065 = vmatpush.bf16.msra.mxu2 %v1978_v8  ;;  %v1967_v19 = vld [vmem:[#allocation4 + $0x1a8] sm:$0xf0]  ;;  %1024 = vmatpush.bf16.msra.mxu1 %v1902_v12  ;;  %v2328_v8 = vld [vmem:[#allocation4 + $0x2d4] sm:$0xf0]  ;;  %v2327_v12 = vld [vmem:[#allocation4 + $0x2d4] sm:$0xf]  ;;  %v2059_v15 = vor.u32 %v2311_v9, %v2056_v11 }
  0xc4   : > { %v1970_v20 = vor.u32 %v2289_v18, %v1967_v19  ;;  %1038 = vmatpush.bf16.msra.mxu3 %v1966_v16  ;;  %1052 = vmatpush.bf16.msra.mxu0 %v1906_v17  ;;  %v2120_v13 = vld [vmem:[#allocation4 + $0x2d8] sm:$0xf0]  ;;  %v2119_v14 = vor.u32 %v2328_v8, %v2118_v7  ;;  %v589_v19 = vld [vmem:[%s2639_s4] sm:$0x3]  ;;  %v2305_v7 = vld [vmem:[#allocation4 + $0x224] sm:$0xf] }
  0xc5   : > { %v556_v23 = vmax.f32 %v551_v21, 0.0  ;;  %v1893_v21 = vld [vmem:[#allocation4 + $0x110] sm:$0xf]  ;;  %v2123_v16 = vor.u32 %v2327_v12, %v2120_v13  ;;  %v2032_v8 = vld [vmem:[#allocation4 + $0x228] sm:$0xf0] }
  0xc6   : > { %v2321_v11 = vld [vmem:[#allocation4 + $0x2a4] sm:$0xf]  ;;  %v2096_v12 = vld [vmem:[#allocation4 + $0x2a8] sm:$0xf0] }
  0xc7   : > { %v591_v24 = vpack.c.bf16 %v556_v23, %v554_v22  ;;  %v2272_v22 = vld [vmem:[#allocation4 + $0x114] sm:$0xf0]  ;;  %v1957_v23 = vld [vmem:[#allocation4 + $0x190] sm:$0xf]  ;;  %1066 = vmatpush.bf16.msra.mxu2 %v1970_v20  ;;  %v2099_v13 = vor.u32 %v2321_v11, %v2096_v12 }
  0xc8   : > { %v1958_v28 = vor.u32 %v2288_v25, %v1957_v23  ;;  %1053 = vmatpush.bf16.msra.mxu0 %v1898_v29  ;;  %v594_v23 = vperm.slane %v589_v19, 1  ;;  %v2334_v11 = vld [vmem:[%s2640_s5 + $0x8] sm:$0xff] }
  0xc9   : > { %779 = vmatmul.bf16.vlgmr.msrb.gmra.mxu3 %v591_v24  ;;  %807 = vmatmul.bf16.vlgmr.msrb.gmra.mxu2 %v591_v24  ;;  %v1894_v24 = vor.u32 %v2272_v22, %v1893_v21  ;;  %v593_v22 = vperm.slane %v589_v19, 0  ;;  %v2303_v19 = vld [vmem:[#allocation4 + $0x214] sm:$0xf]  ;;  %v2342_v12 = vld [vmem:[%s2640_s5 + $0x48] sm:$0xff] }
  0xca   : > { %1039 = vmatpush.bf16.msra.mxu3 %v1958_v28 }
  0xcb   : > { %1025 = vmatpush.bf16.msra.mxu1 %v1894_v24  ;;  %1067 = vmatpush.bf16.msra.mxu2 %v1962_v32 }
  0xcc   : > { %1054 = vmatpush.bf16.msra.mxu0 %v1890_v41 }
  0xce   : > { %1040 = vmatpush.bf16.msra.mxu3 %v1950_v40 }
  0xcf   : > { %1026 = vmatpush.bf16.msra.mxu1 %v1886_v36  ;;  %1068 = vmatpush.bf16.msra.mxu2 %v1954_v44  ;;  %v2047_v44 = vor.u32 %v2310_v43, %v2046_v42  ;;  %v2338_v42 = vld [vmem:[%s2640_s5 + $0x28] sm:$0xff] }
  0xd0   : > { %1309 = vmatpush.bf16.msrb.mxu0 %v2075_v53  ;;  %v2115_v53 = vor.u32 %v2325_v50, %v2112_v51  ;;  %v2346_v43 = vld [vmem:[%s2640_s5 + $0x68] sm:$0xff] }
  0xd2   : > { %1295 = vmatpush.bf16.msrb.mxu3 %v2135_v52  ;;  %v2051_v52 = vor.u32 %v2309_v47, %v2048_v49 }
  0xd3   : > { %1281 = vmatpush.bf16.msrb.mxu1 %v2071_v48  ;;  %1323 = vmatpush.bf16.msrb.mxu2 %v2139_v57  ;;  %v2111_v48 = vor.u32 %v2326_v46, %v2110_v45  ;;  %v2039_v57 = vor.u32 %v2308_v55, %v2038_v54  ;;  %v1882_v46 = vld [vmem:[%s2639_s4 + $0x2] sm:$0x3] }
  0xd4   : > { %1310 = vmatpush.bf16.msrb.mxu0 %v2067_v2  ;;  %v2030_v2 = vld [vmem:[#allocation4 + $0x220] sm:$0xf]  ;;  %v856_v50 = vperm.slane %v1882_v46, 1 }
  0xd5   : > { %v2031_v5 = vor.u32 %v2306_v3, %v2030_v2 }
  0xd6   : > { %1296 = vmatpush.bf16.msrb.mxu3 %v2127_v1  ;;  %v2107_v1 = vor.u32 %v2323_v63, %v2104_v0 }
  0xd7   : > { %1282 = vmatpush.bf16.msrb.mxu1 %v2063_v61  ;;  %1324 = vmatpush.bf16.msrb.mxu2 %v2131_v6  ;;  %v2103_v61 = vor.u32 %v2324_v58, %v2102_v56  ;;  %v2322_v6 = vld [vmem:[#allocation4 + $0x2a4] sm:$0xf0] }
  0xd8   : > { %1311 = vmatpush.bf16.msrb.mxu0 %v2059_v15  ;;  %v2095_v9 = vor.u32 %v2322_v6, %v2094_v4  ;;  %v2304_v15 = vld [vmem:[#allocation4 + $0x214] sm:$0xf0]  ;;  %v2345_v6 = vld [vmem:[%s2640_s5 + $0x60] sm:$0xff] }
  0xda   : > { %1297 = vmatpush.bf16.msrb.mxu3 %v2119_v14  ;;  %v2022_v14 = vld [vmem:[#allocation4 + $0x210] sm:$0xf] }
  0xdb   : > { %1283 = vmatpush.bf16.msrb.mxu1 %v2055_v10  ;;  %1325 = vmatpush.bf16.msrb.mxu2 %v2123_v16  ;;  %v2035_v10 = vor.u32 %v2305_v7, %v2032_v8  ;;  %v2086_v16 = vld [vmem:[#allocation4 + $0x290] sm:$0xf]  ;;  %v2336_v7 = vld [vmem:[%s2640_s5 + $0x18] sm:$0xff] }
  0xdc   : > { %1312 = vmatpush.bf16.msrb.mxu0 %v2051_v52  ;;  %v2344_v8 = vld [vmem:[%s2640_s5 + $0x58] sm:$0xff] }
  0xde   : > { %1298 = vmatpush.bf16.msrb.mxu3 %v2111_v48  ;;  %v855_v48 = vperm.slane %v1882_v46, 0 }
  0xdf   : > { %1284 = vmatpush.bf16.msrb.mxu1 %v2047_v44  ;;  %1326 = vmatpush.bf16.msrb.mxu2 %v2115_v53 }
  0xe0   : > { %1313 = vmatpush.bf16.msrb.mxu0 %v2043_v62 }
  0xe2   : > { %1299 = vmatpush.bf16.msrb.mxu3 %v2103_v61 }
  0xe3   : > { %1285 = vmatpush.bf16.msrb.mxu1 %v2039_v57  ;;  %1327 = vmatpush.bf16.msrb.mxu2 %v2107_v1 }
  0xe4   : > { %1314 = vmatpush.bf16.msrb.mxu0 %v2035_v10  ;;  %v2343_v10 = vld [vmem:[%s2640_s5 + $0x50] sm:$0xff] }
  0xe6   : > { %1300 = vmatpush.bf16.msrb.mxu3 %v2095_v9  ;;  %v2335_v9 = vld [vmem:[%s2640_s5 + $0x10] sm:$0xff] }
  0xe7   : > { %1286 = vmatpush.bf16.msrb.mxu1 %v2031_v5  ;;  %1328 = vmatpush.bf16.msrb.mxu2 %v2099_v13  ;;  %v2337_v5 = vld [vmem:[%s2640_s5 + $0x20] sm:$0xff] }
  0xe8   : > { %v2333_v13 = vld [vmem:[%s2640_s5] sm:$0xff] }
 0x13f   : > { %v766_v17 = vpop.f32.mrf.mxu1  ;;  %v794_v18 = vpop.f32.mrf.mxu0 }
 0x140   : > { %v767_v26 = vadd.f32 %v766_v17, %v593_v22  ;;  %v795_v27 = vadd.f32 %v794_v18, %v594_v23  ;;  %v2023_v17 = vor.u32 %v2304_v15, %v2022_v14  ;;  %v2320_v18 = vld [vmem:[#allocation4 + $0x294] sm:$0xf0]  ;;  %v2341_v14 = vld [vmem:[%s2640_s5 + $0x40] sm:$0xff] }
 0x142   : > { %1287 = vmatpush.bf16.msrb.mxu1 %v2023_v17  ;;  %v2011_v17 = vld [vmem:[%s2639_s4 + $0x4] sm:$0x3] }
 0x147   : > { %v768_v24 = vpop.f32.mrf.mxu1  ;;  %v796_v25 = vpop.f32.mrf.mxu0 }
 0x148   : > { %v769_v28 = vadd.f32 %v768_v24, %v593_v22  ;;  %v797_v29 = vadd.f32 %v796_v25, %v594_v23  ;;  %v2319_v23 = vld [vmem:[#allocation4 + $0x294] sm:$0xf]  ;;  %v2088_v24 = vld [vmem:[#allocation4 + $0x298] sm:$0xf0] }
 0x149   : > { %v2091_v25 = vor.u32 %v2319_v23, %v2088_v24 }
 0x14b   : > { %1329 = vmatpush.bf16.msrb.mxu2 %v2091_v25 }
 0x14c   : > { %v780_v20 = vpop.f32.mrf.mxu3  ;;  %v808_v21 = vpop.f32.mrf.mxu2 }
 0x14d   : > { %v781_v30 = vadd.f32 %v780_v20, %v767_v26  ;;  %v809_v31 = vadd.f32 %v808_v21, %v795_v27  ;;  %v2024_v20 = vld [vmem:[#allocation4 + $0x218] sm:$0xf0]  ;;  %v2087_v21 = vor.u32 %v2320_v18, %v2086_v16  ;;  %v2014_v26 = vld [vmem:[#allocation4 + $0x200] sm:$0xf]  ;;  %v2302_v27 = vld [vmem:[#allocation4 + $0x204] sm:$0xf0] }
 0x14e   : > { %v2027_v22 = vor.u32 %v2303_v19, %v2024_v20  ;;  %v1117_v20 = vperm.slane %v2011_v17, 0 }
 0x14f   : > { %v813_v36 = vmax.f32 %v781_v30, 0.0  ;;  %v814_v37 = vmax.f32 %v809_v31, 0.0  ;;  %1301 = vmatpush.bf16.msrb.mxu3 %v2087_v21  ;;  %v2318_v30 = vld [vmem:[#allocation4 + $0x284] sm:$0xf0]  ;;  %v2301_v31 = vld [vmem:[#allocation4 + $0x204] sm:$0xf] }
 0x150   : > { %1315 = vmatpush.bf16.msrb.mxu0 %v2027_v22  ;;  %v1118_v21 = vperm.slane %v2011_v17, 1 }
 0x154   : > { %v782_v32 = vpop.f32.mrf.mxu3  ;;  %v810_v33 = vpop.f32.mrf.mxu2 }
 0x155   : > { %v783_v34 = vadd.f32 %v782_v32, %v769_v28  ;;  %v811_v35 = vadd.f32 %v810_v33, %v797_v29  ;;  %v2078_v28 = vld [vmem:[#allocation4 + $0x280] sm:$0xf]  ;;  %v2015_v29 = vor.u32 %v2302_v27, %v2014_v26  ;;  %v2016_v32 = vld [vmem:[#allocation4 + $0x208] sm:$0xf0] }
 0x156   : > { %v2079_v33 = vor.u32 %v2318_v30, %v2078_v28 }
 0x157   : > { %v815_v38 = vmax.f32 %v783_v34, 0.0  ;;  %v816_v39 = vmax.f32 %v811_v35, 0.0  ;;  %v2019_v34 = vor.u32 %v2301_v31, %v2016_v32  ;;  %v2317_v35 = vld [vmem:[#allocation4 + $0x284] sm:$0xf]  ;;  %1288 = vmatpush.bf16.msrb.mxu1 %v2015_v29 }
 0x158   : > { %1302 = vmatpush.bf16.msrb.mxu3 %v2079_v33 }
 0x159   : > { %v852_v40 = vpack.c.bf16 %v815_v38, %v813_v36  ;;  %v853_v41 = vpack.c.bf16 %v816_v39, %v814_v37  ;;  %v2080_v36 = vld [vmem:[#allocation4 + $0x288] sm:$0xf0]  ;;  %1316 = vmatpush.bf16.msrb.mxu0 %v2019_v34 }
 0x15a   : > { %v2083_v37 = vor.u32 %v2317_v35, %v2080_v36  ;;  %v2340_v38 = vld [vmem:[%s2640_s5 + $0x38] sm:$0xff] }
 0x15b   : > { %1027 = vmatmul.bf16.vlgmr.msra.gmra.mxu1 %v852_v40  ;;  %1041 = vmatmul.bf16.vlgmr.msra.gmra.mxu3 %v853_v41  ;;  %v2348_v39 = vld [vmem:[%s2640_s5 + $0x78] sm:$0xff] }
 0x15c   : > { %1055 = vmatmul.bf16.vlgmr.msra.gmra.mxu0 %v852_v40  ;;  %1069 = vmatmul.bf16.vlgmr.msra.gmra.mxu2 %v853_v41  ;;  %v2339_v40 = vld [vmem:[%s2640_s5 + $0x30] sm:$0xff] }
 0x15d   : > { %1330 = vmatpush.bf16.msrb.mxu2 %v2083_v37  ;;  %1475 = vmatpush.bf16.msra.mxu1 %v2340_v38  ;;  %v2347_v41 = vld [vmem:[%s2640_s5 + $0x70] sm:$0xff] }
 0x15e   : > { %1489 = vmatpush.bf16.msra.mxu3 %v2348_v39 }
 0x161   : > { %1476 = vmatpush.bf16.msra.mxu1 %v2339_v40 }
 0x162   : > { %1490 = vmatpush.bf16.msra.mxu3 %v2347_v41  ;;  %v2380_v41 = vld [vmem:[%s2641_s6] ss:$0 sm:$0xff] }
 0x165   : > { %1477 = vmatpush.bf16.msra.mxu1 %v2338_v42 }
 0x166   : > { %1491 = vmatpush.bf16.msra.mxu3 %v2346_v43 }
 0x169   : > { %1478 = vmatpush.bf16.msra.mxu1 %v2337_v5 }
 0x16a   : > { %1492 = vmatpush.bf16.msra.mxu3 %v2345_v6 }
 0x16d   : > { %1479 = vmatpush.bf16.msra.mxu1 %v2336_v7 }
 0x16e   : > { %1493 = vmatpush.bf16.msra.mxu3 %v2344_v8 }
 0x171   : > { %1480 = vmatpush.bf16.msra.mxu1 %v2335_v9 }
 0x172   : > { %1494 = vmatpush.bf16.msra.mxu3 %v2343_v10 }
 0x175   : > { %1481 = vmatpush.bf16.msra.mxu1 %v2334_v11 }
 0x176   : > { %1495 = vmatpush.bf16.msra.mxu3 %v2342_v12 }
 0x179   : > { %1482 = vmatpush.bf16.msra.mxu1 %v2333_v13 }
 0x17a   : > { %1496 = vmatpush.bf16.msra.mxu3 %v2341_v14 }
 0x1d8   : > { %v1028_v44 = vpop.f32.mrf.mxu1 }
 0x1d9   : > { %v1056_v45 = vpop.f32.mrf.mxu0  ;;  %v1029_v52 = vadd.f32 %v1028_v44, %v855_v48 }
 0x1da   : > { %v1057_v54 = vadd.f32 %v1056_v45, %v856_v50 }
 0x1de   : > { %v1042_v47 = vpop.f32.mrf.mxu3 }
 0x1df   : > { %v1070_v49 = vpop.f32.mrf.mxu2  ;;  %v1043_v55 = vadd.f32 %v1042_v47, %v1029_v52 }
 0x1e0   : > { %v1030_v51 = vpop.f32.mrf.mxu1  ;;  %v1071_v57 = vadd.f32 %v1070_v49, %v1057_v54 }
 0x1e1   : > { %v1058_v53 = vpop.f32.mrf.mxu0  ;;  %v1031_v56 = vadd.f32 %v1030_v51, %v855_v48  ;;  %v1075_v63 = vmax.f32 %v1043_v55, 0.0 }
 0x1e2   : > { %v1059_v58 = vadd.f32 %v1058_v53, %v856_v50  ;;  %v1076_v1 = vmax.f32 %v1071_v57, 0.0 }
 0x1e6   : > { %v1044_v59 = vpop.f32.mrf.mxu3 }
 0x1e7   : > { %v1045_v60 = vadd.f32 %v1044_v59, %v1031_v56  ;;  %v1072_v61 = vpop.f32.mrf.mxu2 }
 0x1e8   : > { %v1073_v62 = vadd.f32 %v1072_v61, %v1059_v58 }
 0x1e9   : > { %v1077_v0 = vmax.f32 %v1045_v60, 0.0 }
 0x1ea   : > { %v1078_v2 = vmax.f32 %v1073_v62, 0.0 }
 0x1eb   : > { %v1114_v3 = vpack.c.bf16 %v1077_v0, %v1075_v63 }
 0x1ec   : > { %v1115_v4 = vpack.c.bf16 %v1078_v2, %v1076_v1 }
 0x1ed   : > { %1289 = vmatmul.bf16.vlgmr.msrb.gmra.mxu1 %v1114_v3  ;;  %1317 = vmatmul.bf16.vlgmr.msrb.gmra.mxu0 %v1114_v3 }
 0x1ee   : > { %1303 = vmatmul.bf16.vlgmr.msrb.gmra.mxu3 %v1115_v4  ;;  %1331 = vmatmul.bf16.vlgmr.msrb.gmra.mxu2 %v1115_v4 }
 0x26a   : > { %v1290_v15 = vpop.f32.mrf.mxu1  ;;  %v1318_v16 = vpop.f32.mrf.mxu0 }
 0x26b   : > { %v1291_v24 = vadd.f32 %v1290_v15, %v1117_v20  ;;  %v1319_v25 = vadd.f32 %v1318_v16, %v1118_v21 }
 0x271   : > { %v1304_v18 = vpop.f32.mrf.mxu3  ;;  %v1332_v19 = vpop.f32.mrf.mxu2 }
 0x272   : > { %v1292_v22 = vpop.f32.mrf.mxu1  ;;  %v1320_v23 = vpop.f32.mrf.mxu0  ;;  %v1305_v26 = vadd.f32 %v1304_v18, %v1291_v24  ;;  %v1333_v27 = vadd.f32 %v1332_v19, %v1319_v25 }
 0x273   : > { %v1293_v28 = vadd.f32 %v1292_v22, %v1117_v20  ;;  %v1321_v29 = vadd.f32 %v1320_v23, %v1118_v21 }
 0x274   : > { %v1337_v34 = vmax.f32 %v1305_v26, 0.0  ;;  %v1338_v35 = vmax.f32 %v1333_v27, 0.0 }
 0x279   : > { %v1306_v30 = vpop.f32.mrf.mxu3  ;;  %v1334_v31 = vpop.f32.mrf.mxu2 }
 0x27a   : > { %v1307_v32 = vadd.f32 %v1306_v30, %v1293_v28  ;;  %v1335_v33 = vadd.f32 %v1334_v31, %v1321_v29 }
 0x27c   : > { %v1339_v36 = vmax.f32 %v1307_v32, 0.0  ;;  %v1340_v37 = vmax.f32 %v1335_v33, 0.0 }
 0x27e   : > { %v1341_v38 = vpack.c.bf16 %v1339_v36, %v1337_v34  ;;  %v1342_v39 = vpack.c.bf16 %v1340_v37, %v1338_v35 }
 0x280   : > { %1483 = vmatmul.bf16.vlgmr.msra.gmra.mxu1 %v1341_v38  ;;  %1497 = vmatmul.bf16.vlgmr.msra.gmra.mxu3 %v1342_v39 }
 0x2fd   : > { %v1484_v40 = vpop.f32.mrf.mxu1 }
 0x2fe   : > { %v1485_v42 = vadd.f32 %v2380_v41, %v1484_v40 }
 0x303   : > { %v1498_v43 = vpop.f32.mrf.mxu3 }
 0x304   : > { %v1499_v44 = vadd.f32 %v1498_v43, %v1485_v42 }
 0x305   : > { %v1486_v46 = vpop.f32.mrf.mxu1 }
 0x306   : > { %v2204_v45 = vmul.f32 -1.442695, %v1499_v44  ;;  %v1487_v47 = vadd.f32 %v2380_v41, %v1486_v46 }
 0x308   : > { %2381 = vpow2.f32 %v2204_v45 }
 0x30b   : > { %v1500_v48 = vpop.f32.mrf.mxu3 }
 0x30c   : > { %v1501_v49 = vadd.f32 %v1500_v48, %v1487_v47 }
 0x30e   : > { %v2382_v50 = vpop.eup %2381  ;;  %v2205_v51 = vmul.f32 -1.442695, %v1501_v49 }
 0x30f   : > { %v1509_v52 = vadd.f32 1.0, %v2382_v50 }
 0x310   : > { %2383 = vpow2.f32 %v2205_v51 }
 0x311   : > { %2385 = vrcp.f32 %v1509_v52  ;;  %v1522_v58 = vand.u32 2147483648, %v1509_v52  ;;  %v1520_v60 = vand.u32 2147483647, %v1509_v52  ;;  %vm1516_vm2 = vweird.f32 %v1509_v52 }
 0x313   : > { %v1523_v63 = vor.u32 1.1754944e-38, %v1522_v58  ;;  %vm1521_vm4 = vcmp.eq.f32.partialorder %v1520_v60, 8.507059e+37 }
 0x316   : > { %v2384_v53 = vpop.eup %2383 }
 0x317   : > { %v2386_v54 = vpop.eup %2385  ;;  %v1510_v55 = vadd.f32 1.0, %v2384_v53 }
 0x318   : > { %v1512_v56 = vmul.f32 %v2386_v54, %v1509_v52  ;;  %vm1517_vm1 = vweird.f32 %v2386_v54 }
 0x319   : > { %2387 = vrcp.f32 %v1510_v55  ;;  %vm1518_vm3 = vmor %vm1516_vm2, %vm1517_vm1  ;;  %v1537_v5 = vand.u32 2147483648, %v1510_v55  ;;  %v1535_v8 = vand.u32 2147483647, %v1510_v55  ;;  %vm1531_vm7 = vweird.f32 %v1510_v55 }
 0x31a   : > { %v1513_v57 = vsub.f32 1.0, %v1512_v56 }
 0x31b   : > { %v1538_v10 = vor.u32 1.1754944e-38, %v1537_v5  ;;  %vm1536_vm9 = vcmp.eq.f32.partialorder %v1535_v8, 8.507059e+37 }
 0x31c   : > { %v1514_v59 = vmul.f32 %v2386_v54, %v1513_v57 }
 0x31e   : > { %v1515_v61 = vadd.f32 %v2386_v54, %v1514_v59 }
 0x31f   : > { %v2388_v62 = vpop.eup %2387 }
 0x320   : > { %v1519_v0 = vsel %vm1518_vm3, %v2386_v54, %v1515_v61  ;;  %v1527_v1 = vmul.f32 %v2388_v62, %v1510_v55  ;;  %vm1532_vm6 = vweird.f32 %v2388_v62 }
 0x321   : > { %v1524_v2 = vsel %vm1521_vm4, %v1523_v63, %v1519_v0  ;;  %vm1533_vm8 = vmor %vm1531_vm7, %vm1532_vm6 }
 0x322   : > { %v1541_v3 = vmul.f32 9.0, %v1524_v2  ;;  %v1528_v4 = vsub.f32 1.0, %v1527_v1 }
 0x324   : > { %v1543_v6 = vadd.f32 1.0, %v1541_v3  ;;  %v1529_v7 = vmul.f32 %v2388_v62, %v1528_v4 }
 0x326   : > { %1546 = vst.msk [vmem:[%s317_s27] sm:$0xff] %vm1545_vm5, %v1543_v6  ;;  %v1530_v9 = vadd.f32 %v2388_v62, %v1529_v7 }
 0x328   : > { %v1534_v11 = vsel %vm1533_vm8, %v2388_v62, %v1530_v9 }
 0x329   : > { %v1539_v12 = vsel %vm1536_vm9, %v1538_v10, %v1534_v11 }
 0x32a   : > { %v1542_v13 = vmul.f32 9.0, %v1539_v12 }
 0x32c   : > { %v1544_v14 = vadd.f32 1.0, %v1542_v13 }
 0x32e   : > { %1547 = vst.msk [vmem:[%s317_s27 + $0x8] sm:$0xff] %vm1545_vm5, %v1544_v14 }
 0x32f PF: > { %s19_s24 = sadd.s32 1, %s2463_s24  }
 0x330   : > { %p16_p7 = scmp.ge.s32.totalorder %s19_s24, 4  }
 0x332   :  { %18 = sbr.rel (!%p16_p7) target bundleno = 2 (0x2), region = 91 }
 0x337   :  { %1570 = vsyncpa [#allocation3], 1 }
 0x338   :  { %1572 = vsyncpa [#allocation3 + $0x1], 1 }
 0x339   :  { %1573 = vsyncpa [#allocation5], 1 }

</bundles_post_ra>
